<compile_context>
chip_gen: v6e
topology: v6e:2x2x1
jax: 0.10.0
libtpu: 0.0.40
codegen_flags: <defaults>
</compile_context>

<pallas_src>
import functools

import jax
import jax.numpy as jnp
from jax.experimental import pallas as pl
from jax.experimental.pallas import tpu as pltpu


def _cdiv(a, b):
    return (a + b - 1) // b


def _round_up(a, m):
    return _cdiv(a, m) * m


def _focal_weight(one_minus_p, gamma):
    """(1 - p) ** gamma. Integer gamma -> repeated VPU multiplies (no EUP pow)."""
    if float(gamma) == int(gamma) and 0 <= int(gamma) <= 16:
        g = int(gamma)
        if g == 0:
            return jnp.ones_like(one_minus_p)
        result = None
        base = one_minus_p
        while g:
            if g & 1:
                result = base if result is None else result * base
            g >>= 1
            if g:
                base = base * base
        return result
    # Non-integer gamma: fall back to the transcendental pow (EUP).
    return jnp.power(one_minus_p, gamma)


def _focal_kernel_rows_on_lanes(x_ref, o_ref, acc_ref, *, gamma, n_valid, col_tile):
    """Block is (C, col_tile): classes on sublanes, rows lane-dense (C < 128)."""
    p_idx = pl.program_id(0)          # parallel split (TensorCore shard on v7x)
    b_idx = pl.program_id(1)          # sequential accumulation axis
    nb = pl.num_programs(1)

    @pl.when(b_idx == 0)
    def _():
        acc_ref[...] = jnp.zeros_like(acc_ref)

    x = x_ref[...].astype(jnp.float32)                     # (C, col_tile)
    m = jnp.max(x, axis=0, keepdims=True)
    e = jnp.exp(x - m)
    s = jnp.sum(e, axis=0, keepdims=True)
    p = e / s                                              # softmax over classes
    logp = (x - m) - jnp.log(s)                            # log-softmax
    loss = -_focal_weight(1.0 - p, gamma) * logp           # (C, col_tile)

    # Mask out padded rows (columns past the true N).
    col = (p_idx * nb + b_idx) * col_tile + jax.lax.broadcasted_iota(
        jnp.int32, loss.shape, 1)
    loss = jnp.where(col < n_valid, loss, 0.0)

    acc_ref[...] += loss                                   # no reduce in the hot loop

    @pl.when(b_idx == nb - 1)
    def _():
        o_ref[...] = jnp.sum(acc_ref[...]).reshape(1, 1, 1)


def _focal_kernel_classes_on_lanes(x_ref, o_ref, acc_ref, *, gamma, n_valid, row_tile):
    """Block is (row_tile, C): used when the class axis is already lane-dense."""
    p_idx = pl.program_id(0)
    b_idx = pl.program_id(1)
    nb = pl.num_programs(1)

    @pl.when(b_idx == 0)
    def _():
        acc_ref[...] = jnp.zeros_like(acc_ref)

    x = x_ref[...].astype(jnp.float32)                     # (row_tile, C)
    m = jnp.max(x, axis=1, keepdims=True)
    e = jnp.exp(x - m)
    s = jnp.sum(e, axis=1, keepdims=True)
    p = e / s
    logp = (x - m) - jnp.log(s)
    loss = -_focal_weight(1.0 - p, gamma) * logp           # (row_tile, C)

    row = (p_idx * nb + b_idx) * row_tile + jax.lax.broadcasted_iota(
        jnp.int32, loss.shape, 0)
    loss = jnp.where(row < n_valid, loss, 0.0)

    acc_ref[...] += jnp.sum(loss, axis=0, keepdims=True)   # (1, C) lane-parallel partials

    @pl.when(b_idx == nb - 1)
    def _():
        o_ref[...] = jnp.sum(acc_ref[...]).reshape(1, 1, 1)


_NUM_PARALLEL = 2                 # leading "parallel" grid axis (2 TCs on v7x)
_VMEM_LIMIT = 32 * 1024 * 1024    # explicit scoped-VMEM request (safe on v5e/v6e/v7x)


def focal_loss(preds, labels=None, *, gamma=2.0, size_average=True):
    """Pallas implementation of FocalLoss.forward. `labels` is unused, exactly
    as in the reference PyTorch module."""
    del labels  # faithful to the reference: labels never enter the loss
    C = preds.shape[-1]
    x = preds.reshape(-1, C)      # keep native dtype; cast to f32 inside kernel
    N = x.shape[0]
    P = _NUM_PARALLEL

    if C < 128:
        # Lane-dense layout: rows ride the 128-lane axis, classes the sublanes.
        xt = x.T                                                   # (C, N)
        col_tile = min(2048, _round_up(_cdiv(N, P), 128))
        B = _cdiv(N, P * col_tile)
        n_pad = P * B * col_tile
        if n_pad != N:
            xt = jnp.pad(xt, ((0, 0), (0, n_pad - N)))
        kernel = functools.partial(
            _focal_kernel_rows_on_lanes, gamma=float(gamma), n_valid=N,
            col_tile=col_tile)
        in_spec = pl.BlockSpec((C, col_tile), lambda p, b, B=B: (0, p * B + b))
        scratch = pltpu.VMEM((C, col_tile), jnp.float32)
        operand = xt
    else:
        # Class axis already lane-dense; tile rows with a VMEM-sized block.
        row_cap = max(16, ((8 * 1024 * 1024) // (C * 4)) // 16 * 16)
        row_tile = min(1024, row_cap, _round_up(_cdiv(N, P), 16))
        B = _cdiv(N, P * row_tile)
        n_pad = P * B * row_tile
        operand = jnp.pad(x, ((0, n_pad - N), (0, 0))) if n_pad != N else x
        kernel = functools.partial(
            _focal_kernel_classes_on_lanes, gamma=float(gamma), n_valid=N,
            row_tile=row_tile)
        in_spec = pl.BlockSpec((row_tile, C), lambda p, b, B=B: (p * B + b, 0))
        scratch = pltpu.VMEM((1, C), jnp.float32)

    partials = pl.pallas_call(
        kernel,
        out_shape=jax.ShapeDtypeStruct((P, 1, 1), jnp.float32),
        grid_spec=pltpu.PrefetchScalarGridSpec(
            num_scalar_prefetch=0,
            grid=(P, B),
            in_specs=[in_spec],
            out_specs=pl.BlockSpec((1, 1, 1), lambda p, b: (p, 0, 0)),
            scratch_shapes=[scratch],
        ),
        compiler_params=pltpu.CompilerParams(
            dimension_semantics=("parallel", "arbitrary"),
            vmem_limit_bytes=_VMEM_LIMIT,
        ),
    )(operand)

    total = jnp.sum(partials)     # tiny (P,) reduction finished in JAX
    if size_average:
        return total / jnp.float32(N * C)
    return total


def _focal_loss_ref(preds, gamma=2.0, size_average=True):
    """Pure-JAX reference matching the PyTorch forward exactly."""
    x = preds.reshape(-1, preds.shape[-1]).astype(jnp.float32)
    p = jax.nn.softmax(x, axis=1)
    logp = jnp.log(p)
    loss = -jnp.power(1.0 - p, gamma) * logp
    return jnp.mean(loss) if size_average else jnp.sum(loss)


if __name__ == "__main__":
    key = jax.random.PRNGKey(0)
    k1, k2, k3, k4 = jax.random.split(key, 4)

    # --- Test 1: primary case (lane-dense path), integer gamma ---------------
    # batch=8, seq=8, num_classes=4 -> N=64 rows. gamma / number_class are CLI
    # args in the original script; fixed deterministically here.
    gamma = 2.0
    num_classes = 4
    preds = jax.random.normal(k1, (8, 8, num_classes), dtype=jnp.float32)
    labels = jax.random.randint(k2, (8, 8), 0, num_classes)  # unused by the loss
    out = jax.block_until_ready(focal_loss(preds, labels, gamma=gamma))
    ref = _focal_loss_ref(preds, gamma=gamma)
    assert jnp.allclose(out, ref, rtol=1e-5, atol=1e-5), (out, ref)

    # --- Test 2: ragged N (masking), non-integer gamma, bf16 input -----------
    preds2 = jax.random.normal(k3, (5, 7, num_classes), dtype=jnp.bfloat16)
    out2 = jax.block_until_ready(focal_loss(preds2, None, gamma=1.5))
    ref2 = _focal_loss_ref(preds2, gamma=1.5)
    assert jnp.allclose(out2, ref2, rtol=1e-4, atol=1e-4), (out2, ref2)

    # --- Test 3: large C (class-on-lane path), sum reduction -----------------
    preds3 = jax.random.normal(k4, (48, 128), dtype=jnp.float32)
    out3 = jax.block_until_ready(
        focal_loss(preds3, None, gamma=2.0, size_average=False))
    ref3 = _focal_loss_ref(preds3, gamma=2.0, size_average=False)
    assert jnp.allclose(out3, ref3, rtol=1e-4, atol=1e-4), (out3, ref3)

    print("KERNEL_OK")
</pallas_src>

<mosaic_0001>
module attributes {stable_mosaic.version = 11 : i64} {
  func.func @_focal_kernel_rows_on_lanes(%arg0: i32, %arg1: i32, %arg2: memref<4x128xf32, #tpu.memory_space<vmem>>, %arg3: memref<1x1x1xf32, #tpu.memory_space<vmem>>, %arg4: memref<4x128xf32, #tpu.memory_space<vmem>>) attributes {dimension_semantics = [#tpu.dimension_semantics<parallel>, #tpu.dimension_semantics<arbitrary>], iteration_bounds = array<i64: 2, 1>, scalar_prefetch = 0 : i64, scratch_operands = 1 : i64, tpu.core_type = #tpu.core_type<tc>, window_params = [{transform_indices = @transform_0, window_bounds = array<i64: 4, 128>}, {transform_indices = @transform_1, window_bounds = array<i64: 1, 1, 1>}]} {
    %c0_i32 = arith.constant 0 : i32
    %0 = arith.cmpi eq, %arg1, %c0_i32 : i32
    %1 = arith.extui %0 : i1 to i32
    %c0_i32_0 = arith.constant 0 : i32
    %2 = arith.cmpi ne, %1, %c0_i32_0 : i32
    scf.if %2 {
      %cst_12 = arith.constant 0.000000e+00 : f32
      %40 = vector.broadcast %cst_12 : f32 to vector<4x128xf32>
      %c0_13 = arith.constant 0 : index
      %c0_14 = arith.constant 0 : index
      %41 = vector.load %arg4[%c0_13, %c0_14] : memref<4x128xf32, #tpu.memory_space<vmem>>, vector<4x128xf32>
      tpu.vector_store %arg4[%c0_13, %c0_14], %40 {strides = array<i32>} : memref<4x128xf32, #tpu.memory_space<vmem>>, vector<4x128xf32>,
    } else {
    }
    %c0 = arith.constant 0 : index
    %c0_1 = arith.constant 0 : index
    %3 = vector.load %arg2[%c0, %c0_1] : memref<4x128xf32, #tpu.memory_space<vmem>>, vector<4x128xf32>
    %cst = arith.constant dense<0xFF800000> : vector<128xf32>
    %4 = vector.multi_reduction <maximumf>, %3, %cst [0] : vector<4x128xf32> to vector<128xf32>
    %5 = vector.shape_cast %4 : vector<128xf32> to vector<1x128xf32>
    %6 = vector.broadcast %5 : vector<1x128xf32> to vector<4x128xf32>
    %7 = arith.subf %3, %6 : vector<4x128xf32>
    %8 = math.exp %7 : vector<4x128xf32>
    %cst_2 = arith.constant dense<0.000000e+00> : vector<128xf32>
    %9 = vector.multi_reduction <add>, %8, %cst_2 [0] : vector<4x128xf32> to vector<128xf32>
    %10 = vector.shape_cast %9 : vector<128xf32> to vector<1x128xf32>
    %11 = vector.broadcast %10 : vector<1x128xf32> to vector<4x128xf32>
    %12 = arith.divf %8, %11 : vector<4x128xf32>
    %13 = vector.broadcast %5 : vector<1x128xf32> to vector<4x128xf32>
    %14 = arith.subf %3, %13 : vector<4x128xf32>
    %15 = math.log %10 : vector<1x128xf32>
    %16 = vector.broadcast %15 : vector<1x128xf32> to vector<4x128xf32>
    %17 = arith.subf %14, %16 : vector<4x128xf32>
    %cst_3 = arith.constant 1.000000e+00 : f32
    %18 = vector.broadcast %cst_3 : f32 to vector<4x128xf32>
    %19 = arith.subf %18, %12 : vector<4x128xf32>
    %20 = arith.mulf %19, %19 : vector<4x128xf32>
    %cst_4 = arith.constant 0.000000e+00 : f32
    %21 = vector.broadcast %cst_4 : f32 to vector<4x128xf32>
    %22 = arith.subf %21, %20 : vector<4x128xf32>
    %23 = arith.mulf %22, %17 : vector<4x128xf32>
    %c1_i32 = arith.constant 1 : i32
    %24 = arith.muli %arg0, %c1_i32 : i32
    %25 = arith.addi %24, %arg1 : i32
    %c128_i32 = arith.constant 128 : i32
    %26 = arith.muli %25, %c128_i32 : i32
    %27 = tpu.iota {dimensions = array<i32: 1>} : vector<4x128xi32>
    %28 = vector.broadcast %26 : i32 to vector<4x128xi32>
    %29 = arith.addi %28, %27 : vector<4x128xi32>
    %c64_i32 = arith.constant 64 : i32
    %30 = vector.broadcast %c64_i32 : i32 to vector<4x128xi32>
    %31 = arith.cmpi slt, %29, %30 : vector<4x128xi32>
    %cst_5 = arith.constant 0.000000e+00 : f32
    %32 = vector.broadcast %cst_5 : f32 to vector<4x128xf32>
    %33 = arith.select %31, %23, %32 : vector<4x128xi1>, vector<4x128xf32>
    %c0_6 = arith.constant 0 : index
    %c0_7 = arith.constant 0 : index
    %34 = vector.load %arg4[%c0_6, %c0_7] : memref<4x128xf32, #tpu.memory_space<vmem>>, vector<4x128xf32>
    %35 = arith.addf %34, %33 : vector<4x128xf32>
    %c0_8 = arith.constant 0 : index
    %c0_9 = arith.constant 0 : index
    %36 = vector.load %arg4[%c0_8, %c0_9] : memref<4x128xf32, #tpu.memory_space<vmem>>, vector<4x128xf32>
    tpu.vector_store %arg4[%c0_8, %c0_9], %35 {strides = array<i32>} : memref<4x128xf32, #tpu.memory_space<vmem>>, vector<4x128xf32>,
    %c0_i32_10 = arith.constant 0 : i32
    %37 = arith.cmpi eq, %arg1, %c0_i32_10 : i32
    %38 = arith.extui %37 : i1 to i32
    %c0_i32_11 = arith.constant 0 : i32
    %39 = arith.cmpi ne, %38, %c0_i32_11 : i32
    scf.if %39 {
      %c0_12 = arith.constant 0 : index
      %c0_13 = arith.constant 0 : index
      %40 = vector.load %arg4[%c0_12, %c0_13] : memref<4x128xf32, #tpu.memory_space<vmem>>, vector<4x128xf32>
      %41 = vector.shape_cast %40 : vector<4x128xf32> to vector<1x4x128xf32>
      %cst_14 = arith.constant dense<0.000000e+00> : vector<1xf32>
      %42 = vector.multi_reduction <add>, %41, %cst_14 [1, 2] : vector<1x4x128xf32> to vector<1xf32>
      %43 = vector.shape_cast %42 : vector<1xf32> to vector<1x1x1xf32>
      %44 = vector.extract %43[0, 0, 0] : f32 from vector<1x1x1xf32>
      %45 = vector.broadcast %44 : f32 to vector<1x1x1xf32>
      %c0_15 = arith.constant 0 : index
      %c0_16 = arith.constant 0 : index
      %c0_17 = arith.constant 0 : index
      %46 = vector.load %arg3[%c0_15, %c0_16, %c0_17] : memref<1x1x1xf32, #tpu.memory_space<vmem>>, vector<1x1x1xf32>
      tpu.vector_store %arg3[%c0_15, %c0_16, %c0_17], %45 {strides = array<i32>} : memref<1x1x1xf32, #tpu.memory_space<vmem>>, vector<1x1x1xf32>,
    } else {
    }
    return
  }
  func.func @transform_0(%arg0: i32, %arg1: i32) -> (i32, i32) {
    %c1_i32 = arith.constant 1 : i32
    %0 = arith.muli %arg0, %c1_i32 : i32
    %1 = arith.addi %0, %arg1 : i32
    %c0_i32 = arith.constant 0 : i32
    %c0_i32_0 = arith.constant 0 : i32
    return %c0_i32, %1 : i32, i32
  }
  func.func @transform_1(%arg0: i32, %arg1: i32) -> (i32, i32, i32) {
    %c0_i32 = arith.constant 0 : i32
    %c0_i32_0 = arith.constant 0 : i32
    %c0_i32_1 = arith.constant 0 : i32
    return %arg0, %c0_i32, %c0_i32_0 : i32, i32, i32
  }
}

</mosaic_0001>

<bundles_post_ra>
// kernel: tpu_custom_call.1
= control target key start
LH: loop header
LB: loop body
LE: loop exit
PB: predicated region body
PF: predicated region fallthrough
CT: control target
= control target key end

     0   :  { %6 = vsyncpa [#allocation4], 0  ;;  %s546_s0 = inlined_call_operand.hbm [shape: f32[4,256], index: 0, kind: input, shape index: {}]   ;;  %s547_s1 = inlined_call_operand.vmem [shape: f32[2,1,1], index: 1, kind: output, shape index: {}]  }
   0x1   :  { %8 = vsyncpa [#allocation4 + $0x1], 0  ;;  %s442_s6 = smov 0   ;;  %s444_s7 = smov 0  }
   0x2   :  { %s446_s8 = smov 0   ;;  %s448_s9 = smov 0  }
   0x3   :  { %s450_s10 = smov 0   ;;  %s452_s11 = smov 0  }
   0x4 LB: > { %s275_s12 = sadd.s32 4294967295, %s428_s11   ;;  %s26_s13 = sadd.s32 1, %s424_s10  ;;  %s428_s11 = sphi %s452_s11, %s14_s11   ;;  %s424_s10 = sphi %s450_s10, %s555_s10   ;;  %s420_s9 = sphi %s448_s9, %s554_s9   ;;  %s416_s8 = sphi %s446_s8, %s553_s8   ;;  %s412_s7 = sphi %s444_s7, %s552_s7   ;;  %s408_s6 = sphi %s442_s6, %s551_s6  }
   0x5   : > { %p28_p0 = scmp.ge.s32.totalorder %s26_s13, 2  ;;  %s35_s14 = sadd.s32 1, %s416_s8 }
   0x6   : > { %p42_p1 = scmp.ne.s32.totalorder %s416_s8, %s412_s7  ;;  %p43_p2 = scmp.eq.s32.totalorder %s428_s11, 0 }
   0x7   : > { %s557_s13 = smov (%p28_p0, %s26_s13), 0  ;;  %p48_p4 = scmp.ne.s32.totalorder %s412_s7, %s408_s6 }
   0x8   : > { %p478_p3 = por %p43_p2, %p42_p1  ;;  %s32_s16 = ssub.s32 %s424_s10, %s557_s13 }
   0x9   : > { %p49_p5 = scmp.eq.s32.totalorder %s275_s12, 0  ;;  %p33_p6 = scmp.eq.s32.totalorder %s32_s16, 0 }
   0xa   : > { %p294_p8 = scmp.lt.s32.totalorder %s428_s11, 2  ;;  %s98_s19 = sand.u32 1, %s416_s8  }
   0xb   : > { %p485_p7 = por %p49_p5, %p48_p4  ;;  %s280_s20 = sshll.u32 %s424_s10, 6 }
   0xc   : > { %s491_s18 = scalar_select %p33_p6, %s416_s8, %s35_s14  }
   0xd   : > { %s279_s21 = sshll.u32 %s98_s19, 2  ;;  %s108_s24 = scalar_lea.hbm %s546_s0, %s280_s20 }
   0xe   : > { %s102_s25 = scalar_lea.vmem [#allocation3], %s279_s21  ;;  %p500_p9 = pnand %p294_p8, %p478_p3 }
   0xf   : > { %s110_s26 = sshll.u32 %s102_s25, 4  ;;  %p281_p10 = scmp.ge.s32.totalorder %s428_s11, 1  ;;  %s111_s26 = int_to_ptr.vmem [resolvable:$true] %s110_s26 }
  0x10   : > { %p115_p11 = scmp.lt.s32.totalorder %s428_s11, 3  ;;  %s99_s28 = scalar_lea.sflag [#allocation4], %s98_s19 }
  0x11   : > { %p352_p12 = pneg %p500_p9  ;;  %s363_s29 = scalar_lea.vmem %s111_s26, 64 }
  0x12   : > { %p364_p13 = scmp.ne.s32.totalorder %s111_s26, %s363_s29  ;;  %s430_s30 = smov [#allocation3]  }
  0x13   : > { %s368_s2 = sshll.u32 %s430_s30, 4  ;;  %s369_s2 = int_to_ptr.vmem [resolvable:$false] %s368_s2 }
  0x14   : > { %p366_p0 = pnand %p364_p13, %p352_p12  ;;  %s370_s3 = scalar_lea.vmem %s369_s2, 128 }
  0x15   : > { %p371_p2 = scmp.lt.s32.totalorder %s111_s26, %s369_s2  ;;  %p372_p3 = scmp.lt.s32.totalorder %s370_s3, %s363_s29 }
  0x16   : > { %p367_p1 = pneg %p366_p0 }
  0x17   : > { %p373_p4 = por %p372_p3, %p371_p2 }
  0x19   : > { %p374_p5 = pnand %p373_p4, %p367_p1 }
  0x1b   : > { %377 = shalt.err (!%p374_p5)
}
  0x1c   : > { %293 = dma.hbm_to_vmem [thread:$0]  (!%p500_p9), %s108_s24, 64, %s111_s26, %s99_s28  }
  0x1d   : > { %p116_p6 = pnand %p281_p10, %p115_p11 }
  0x1e   : > { %s121_s4 = sand.u32 (!%p116_p6), 1, %s412_s7  }
  0x1f   : > { %119 = sbr.rel (%p116_p6) target bundleno = 320 (0x140), region = 24  ;;  %s282_s5 = sshll.u32 (!%p116_p6), %s121_s4, 2 }
  0x20   : > { %s122_s6 = scalar_lea.sflag (!%p116_p6), [#allocation4], %s121_s4  ;;  %s125_s12 = scalar_lea.vmem (!%p116_p6), [#allocation3], %s282_s5 }
  0x24   : > { %403 = dma.done.wait (%p485_p7), %s122_s6, 64  }
  0x25   : > { %405 = vsyncadd (%p485_p7), %s122_s6, 4294967232  ;;  %v431_v0 = vmov 0.0   ;;  %vm152_vm0 = vcmask 1043456   ;;  %v151_v1 = vld [vmem:[%s125_s12] sm:$0xf]  ;;  %v181_v19 = vlaneseq  ;;  %s283_s14 = sshll.u32 %s420_s9, 7 }
  0x26   : > { %150 = vst [vmem:[#allocation2] sm:$0xf] %v431_v0  ;;  %v153_v2 = vsel %vm152_vm0, %v151_v1, -inf  ;;  %v183_v24 = vstv %s283_s14  ;;  %p143_p7 = scmp.lt.s32.totalorder %s420_s9, 1  ;;  %vm205_vm2 = vcmask 0  }
  0x27   : > { %v154_v3 = vrot.slane %v153_v2, 4  ;;  %v182_v21 = vand.u32 127, %v181_v19 }
  0x28   : > { %s559_s9 = smov (!%p143_p7, %s420_s9), 1 }
  0x29   : > { %v155_v4 = vmax.f32 %v153_v2, %v154_v3  ;;  %v184_v27 = vadd.s32 %v183_v24, %v182_v21  ;;  %s145_s17 = scalar_lea.vmem %s547_s1, %s559_s9 }
  0x2b   : > { %v156_v5 = vrot.slane %v155_v4, 2  ;;  %vm185_vm1 = vcmp.lt.s32.totalorder %v184_v27, 64 }
  0x2d   : > { %v157_v6 = vmax.f32 %v155_v4, %v156_v5  ;;  %v187_v32 = vld [vmem:[#allocation2] sm:$0xf] }
  0x2f   : > { %v158_v7 = vrot.slane %v157_v6, 1 }
  0x31   : > { %v159_v8 = vmax.f32 %v157_v6, %v158_v7 }
  0x33   : > { %v160_v9 = vsub.f32 %v151_v1, %v159_v8 }
  0x35   : > { %v161_v10 = vmul.f32 1.442695, %v160_v9 }
  0x37   : > { %344 = vpow2.f32 %v161_v10 }
  0x44   : > { %v345_v11 = vpop.eup %344 }
  0x45   : > { %v163_v12 = vsel %vm152_vm0, %v345_v11, 0.0 }
  0x46   : > { %v164_v13 = vrot.slane %v163_v12, 4 }
  0x48   : > { %v165_v14 = vadd.f32 %v164_v13, %v163_v12 }
  0x4a   : > { %v166_v15 = vrot.slane %v165_v14, 2 }
  0x4c   : > { %v167_v16 = vadd.f32 %v166_v15, %v165_v14 }
  0x4e   : > { %v168_v17 = vrot.slane %v167_v16, 1 }
  0x50   : > { %v169_v18 = vadd.f32 %v168_v17, %v167_v16 }
  0x52   : > { %346 = vrcp.f32 %v169_v18 }
  0x53   : > { %348 = vlog2.f32 %v169_v18 }
  0x5f   : > { %v347_v20 = vpop.eup %346 }
  0x60   : > { %v349_v22 = vpop.eup %348  ;;  %v171_v23 = vmul.f32 %v347_v20, %v345_v11 }
  0x61   : > { %v173_v25 = vmul.f32 0.6931472, %v349_v22 }
  0x62   : > { %v175_v26 = vsub.f32 1.0, %v171_v23 }
  0x63   : > { %v174_v28 = vsub.f32 %v160_v9, %v173_v25 }
  0x64   : > { %v176_v29 = vmul.f32 %v175_v26, %v175_v26 }
  0x66   : > { %v177_v30 = vsub.f32 0.0, %v176_v29 }
  0x68   : > { %v178_v31 = vmul.f32 %v177_v30, %v174_v28 }
  0x6a   : > { %v186_v33 = vsel %vm185_vm1, %v178_v31, 0.0 }
  0x6b   : > { %v188_v34 = vadd.f32 %v187_v32, %v186_v33 }
  0x6d   : > { %189 = vst [vmem:[#allocation2] sm:$0xf] %v188_v34 }
  0x74   : > { %v193_v35 = vld [vmem:[#allocation2] sm:$0xf] }
  0x75   : > { %v194_v36 = vsel %vm152_vm0, %v193_v35, 0.0 }
  0x76   : > { %195 = vadd.xlane.f32.xlu0 %v194_v36 }
  0xff   : > { %v196_v37 = vpop.xlane.xlu0 %195 }
 0x100   : > { %v197_v38 = vrot.slane %v196_v37, 4 }
 0x102   : > { %v198_v39 = vadd.f32 %v197_v38, %v196_v37 }
 0x104   : > { %v199_v40 = vrot.slane %v198_v39, 2 }
 0x106   : > { %v200_v41 = vadd.f32 %v199_v40, %v198_v39 }
 0x108   : > { %v201_v42 = vrot.slane %v200_v41, 1 }
 0x10a   : > { %v202_v43 = vadd.f32 %v201_v42, %v200_v41 }
 0x10c   : > { %286 = vpush %v202_v43 }
 0x13d   : > { %s287_s19 = spop %286 }
 0x13e   : > { %v204_v44 = vstv %s287_s19 }
 0x13f   : > { %206 = vst.msk [vmem:[%s145_s17] sm:$0x1] %vm205_vm2, %v204_v44 }
 0x140 PF: > { %s14_s11 = sadd.s32 1, %s428_s11   ;;  %s551_s6 = smov %s412_s7 }
 0x141   : > { %p11_p8 = scmp.ge.s32.totalorder %s14_s11, 4   ;;  %s552_s7 = smov %s416_s8 }
 0x142   : > { %s553_s8 = smov %s491_s18  ;;  %s554_s9 = smov %s424_s10 }
 0x143   : > { %s555_s10 = smov %s557_s13  ;;  %13 = sbr.rel (!%p11_p8) target bundleno = 4 (0x4), region = 72 }
 0x148   :  { %224 = vsyncpa [#allocation4], 1 }
 0x149   :  { %226 = vsyncpa [#allocation4 + $0x1], 1 }

</bundles_post_ra>
